<compile_context>
chip_gen: v6e
topology: v6e:2x2x1
jax: 0.10.0
libtpu: 0.0.40
codegen_flags: <defaults>
</compile_context>

<pallas_src>
import math

import jax
import jax.numpy as jnp
from jax.experimental import pallas as pl
from jax.experimental.pallas import tpu as pltpu


def _round_up(n, m):
    return ((n + m - 1) // m) * m


def prepare_fourier_weight(weight):
    """One-time init-style prep.

    Folds the 2*pi scale into the weight and pre-transposes it to
    (in_features, out_features//2) so the kernel body is just
    contract -> cos/sin -> store (no per-tile scale pass, no in-kernel transpose).
    """
    return (2.0 * math.pi) * weight.T  # (din, dh), lane-dense on dh


def _fourier_kernel(x_ref, wt_ref, o_ref):
    x = x_ref[...]            # (tile_b, din) f32
    wt = wt_ref[...]          # (din, dh)     f32, already scaled by 2*pi
    din = x.shape[-1]

    if din < 64:
        # Tiny-K contraction: unrolled broadcast FMAs on the VPU. Avoids MXU
        # push/pop latency and the K-padding waste of the systolic array; at
        # these shapes the kernel is EUP/store bound so VPU work is free filler.
        f = x[:, 0:1] * wt[0:1, :]
        for k in range(1, din):
            f = f + x[:, k : k + 1] * wt[k : k + 1, :]
    else:
        # Natural MXU orientation: contract on the last dim, no transpose.
        f = jnp.dot(x, wt, preferred_element_type=jnp.float32)

    # One fused, full-width store for the whole output tile (lane-dense),
    # instead of two masked half-width slice stores.
    o_ref[...] = jnp.concatenate([jnp.cos(f), jnp.sin(f)], axis=-1).astype(o_ref.dtype)


def fourier_features(x, w_t, *, tile_b=None):
    """x: (B, in_features) f32, w_t: prepared weight (in_features, out_features//2) f32
    -> (B, out_features) f32 with layout [cos | sin]."""
    B, din = x.shape
    din_w, dh = w_t.shape
    assert din == din_w
    dout = 2 * dh

    # Derive the batch tile: large (>=512 rows is where measured HBM efficiency
    # plateaus) but capped by a conservative VMEM budget that also fits v7x's
    # smaller 64 MiB VMEM / 32 MiB scoped default, accounting for BlockSpec
    # double-buffering of x and out.
    if tile_b is None:
        vmem_budget_bytes = 24 * 1024 * 1024
        bytes_per_row = (din + dout) * 4 * 2  # x + out tiles, double-buffered, f32
        tile_b = max(8, min(2048, vmem_budget_bytes // max(bytes_per_row, 1)))
    tile_b = min(tile_b, _round_up(B, 8))
    tile_b = max(8, (tile_b // 8) * 8)

    # Pad batch so every tile is full (block shapes then always satisfy the
    # (8,128) rule and no masked final-tile handling is needed in the kernel).
    Bp = _round_up(B, tile_b)
    if Bp != B:
        x = jnp.pad(x, ((0, Bp - B), (0, 0)))

    out = pl.pallas_call(
        _fourier_kernel,
        out_shape=jax.ShapeDtypeStruct((Bp, dout), x.dtype),
        grid_spec=pltpu.PrefetchScalarGridSpec(
            num_scalar_prefetch=0,
            grid=(Bp // tile_b,),
            in_specs=[
                pl.BlockSpec((tile_b, din), lambda i: (i, 0)),
                pl.BlockSpec((din, dh), lambda i: (0, 0)),  # weight resident in VMEM
            ],
            out_specs=pl.BlockSpec((tile_b, dout), lambda i: (i, 0)),
        ),
        compiler_params=pltpu.CompilerParams(
            # Batch tiles are independent -> shard across both TensorCores on v7x.
            dimension_semantics=("parallel",),
        ),
    )(x, w_t)

    return out[:B] if Bp != B else out


if __name__ == "__main__":
    # Module config: in_features=4, out_features=64 (must be even), std=1.0.
    # NOTE: at this toy size the op is launch-overhead dominated; the kernel is
    # structured for (and pays off at) large batch sizes.
    in_features = 4
    out_features = 64
    std = 1.0
    batch = 8

    key = jax.random.PRNGKey(0)
    kx, kw = jax.random.split(key)

    # Deterministic "randn * std" parameter init (shape [out_features//2, in_features]).
    weight = jax.random.normal(kw, (out_features // 2, in_features), dtype=jnp.float32) * std
    x = jax.random.normal(kx, (batch, in_features), dtype=jnp.float32)

    # One-time (init-style) weight prep: fold 2*pi and transpose.
    w_t = prepare_fourier_weight(weight)

    out = fourier_features(x, w_t)
    out = jax.block_until_ready(out)

    # Pure-JAX reference for correctness (original module semantics).
    f_ref = 2.0 * math.pi * (x @ weight.T)
    ref = jnp.concatenate([jnp.cos(f_ref), jnp.sin(f_ref)], axis=-1)

    assert out.shape == (batch, out_features), out.shape
    assert jnp.allclose(out, ref, atol=1e-4, rtol=1e-5), float(jnp.max(jnp.abs(out - ref)))

    print("KERNEL_OK")
</pallas_src>

<mosaic_0001>
module attributes {stable_mosaic.version = 11 : i64} {
  func.func @_fourier_kernel(%arg0: i32, %arg1: memref<8x4xf32, #tpu.memory_space<vmem>>, %arg2: memref<4x32xf32, #tpu.memory_space<vmem>>, %arg3: memref<8x64xf32, #tpu.memory_space<vmem>>) attributes {dimension_semantics = [#tpu.dimension_semantics<parallel>], iteration_bounds = array<i64: 1>, scalar_prefetch = 0 : i64, scratch_operands = 0 : i64, tpu.core_type = #tpu.core_type<tc>, window_params = [{transform_indices = @transform_0, window_bounds = array<i64: 8, 4>}, {pipeline_mode = #tpu.pipeline_mode<synchronous>, transform_indices = @transform_1, window_bounds = array<i64: 4, 32>}, {transform_indices = @transform_2, window_bounds = array<i64: 8, 64>}]} {
    %c0 = arith.constant 0 : index
    %c0_0 = arith.constant 0 : index
    %0 = vector.load %arg1[%c0, %c0_0] : memref<8x4xf32, #tpu.memory_space<vmem>>, vector<8x4xf32>
    %c0_1 = arith.constant 0 : index
    %c0_2 = arith.constant 0 : index
    %1 = vector.load %arg2[%c0_1, %c0_2] : memref<4x32xf32, #tpu.memory_space<vmem>>, vector<4x32xf32>
    %2 = vector.extract_strided_slice %0 {offsets = [0, 0], sizes = [8, 1], strides = [1, 1]} : vector<8x4xf32> to vector<8x1xf32>
    %3 = vector.extract_strided_slice %1 {offsets = [0, 0], sizes = [1, 32], strides = [1, 1]} : vector<4x32xf32> to vector<1x32xf32>
    %4 = vector.broadcast %2 : vector<8x1xf32> to vector<8x32xf32>
    %5 = vector.broadcast %3 : vector<1x32xf32> to vector<8x32xf32>
    %6 = arith.mulf %4, %5 : vector<8x32xf32>
    %7 = vector.extract_strided_slice %0 {offsets = [0, 1], sizes = [8, 1], strides = [1, 1]} : vector<8x4xf32> to vector<8x1xf32>
    %8 = vector.extract_strided_slice %1 {offsets = [1, 0], sizes = [1, 32], strides = [1, 1]} : vector<4x32xf32> to vector<1x32xf32>
    %9 = vector.broadcast %7 : vector<8x1xf32> to vector<8x32xf32>
    %10 = vector.broadcast %8 : vector<1x32xf32> to vector<8x32xf32>
    %11 = arith.mulf %9, %10 : vector<8x32xf32>
    %12 = arith.addf %6, %11 : vector<8x32xf32>
    %13 = vector.extract_strided_slice %0 {offsets = [0, 2], sizes = [8, 1], strides = [1, 1]} : vector<8x4xf32> to vector<8x1xf32>
    %14 = vector.extract_strided_slice %1 {offsets = [2, 0], sizes = [1, 32], strides = [1, 1]} : vector<4x32xf32> to vector<1x32xf32>
    %15 = vector.broadcast %13 : vector<8x1xf32> to vector<8x32xf32>
    %16 = vector.broadcast %14 : vector<1x32xf32> to vector<8x32xf32>
    %17 = arith.mulf %15, %16 : vector<8x32xf32>
    %18 = arith.addf %12, %17 : vector<8x32xf32>
    %19 = vector.extract_strided_slice %0 {offsets = [0, 3], sizes = [8, 1], strides = [1, 1]} : vector<8x4xf32> to vector<8x1xf32>
    %20 = vector.extract_strided_slice %1 {offsets = [3, 0], sizes = [1, 32], strides = [1, 1]} : vector<4x32xf32> to vector<1x32xf32>
    %21 = vector.broadcast %19 : vector<8x1xf32> to vector<8x32xf32>
    %22 = vector.broadcast %20 : vector<1x32xf32> to vector<8x32xf32>
    %23 = arith.mulf %21, %22 : vector<8x32xf32>
    %24 = arith.addf %18, %23 : vector<8x32xf32>
    %25 = math.cos %24 : vector<8x32xf32>
    %26 = math.sin %24 : vector<8x32xf32>
    %27 = tpu.concatenate %25, %26 in 1 : vector<8x32xf32>, vector<8x32xf32> -> vector<8x64xf32>
    %c0_3 = arith.constant 0 : index
    %c0_4 = arith.constant 0 : index
    %28 = vector.load %arg3[%c0_3, %c0_4] : memref<8x64xf32, #tpu.memory_space<vmem>>, vector<8x64xf32>
    tpu.vector_store %arg3[%c0_3, %c0_4], %27 {strides = array<i32>} : memref<8x64xf32, #tpu.memory_space<vmem>>, vector<8x64xf32>,
    return
  }
  func.func @transform_0(%arg0: i32) -> (i32, i32) {
    %c0_i32 = arith.constant 0 : i32
    %c0_i32_0 = arith.constant 0 : i32
    return %arg0, %c0_i32 : i32, i32
  }
  func.func @transform_1(%arg0: i32) -> (i32, i32) {
    %c0_i32 = arith.constant 0 : i32
    %c0_i32_0 = arith.constant 0 : i32
    %c0_i32_1 = arith.constant 0 : i32
    return %c0_i32, %c0_i32_0 : i32, i32
  }
  func.func @transform_2(%arg0: i32) -> (i32, i32) {
    %c0_i32 = arith.constant 0 : i32
    %c0_i32_0 = arith.constant 0 : i32
    return %arg0, %c0_i32 : i32, i32
  }
}

</mosaic_0001>

<bundles_post_ra>
// kernel: tpu_custom_call.1
= control target key start
LH: loop header
LB: loop body
LE: loop exit
PB: predicated region body
PF: predicated region fallthrough
CT: control target
= control target key end

     0   :  { %v338_v1 = vmov 0   ;;  %v339_v2 = vmov 2   ;;  %s395_s0 = inlined_call_operand.vmem [shape: f32[8,4], index: 0, kind: input, shape index: {}]   ;;  %s396_s1 = inlined_call_operand.vmem [shape: f32[4,32], index: 1, kind: input, shape index: {}]   ;;  %s397_s2 = inlined_call_operand.hbm [shape: f32[8,64], index: 2, kind: output, shape index: {}]  }
   0x1   :  { %v12_v0 = vld [vmem:[%s395_s0] sm:$0xff]  ;;  %307 = vset.pattern.permute.xlu0 %v338_v1  ;;  %309 = vset.pattern.permute.xlu1 %v339_v2 }
   0x2   :  { %7 = vsyncpa [#allocation3], 0  ;;  %16 = vperm.xlu0 %307, %v12_v0   ;;  %35 = vperm.xlu1 %309, %v12_v0   ;;  %v340_v3 = vmov 1   ;;  %v341_v4 = vmov 3   ;;  %v19_v5 = vlaneseq  ;;  %v13_v9 = vld [vmem:[%s396_s1] sm:$0xf] }
   0x3   :  { %v342_v38 = vmov 2102212464   ;;  %v343_v40 = vmov 920167782   ;;  %v344_v44 = vmov 1326507024  }
   0x4   :  { %v20_v6 = vshrl.u32 %v19_v5, 7  ;;  %v345_v46 = vmov 683565275   ;;  %v346_v48 = vmov 2475754826   ;;  %s348_s1 = smov 32  }
   0x5   :  { %v347_v51 = vmov 2131351028   ;;  %s349_s12 = smov [#allocation2]  }
   0x6   :  { %308 = vset.pattern.permute.xlu0 %v340_v3  ;;  %310 = vset.pattern.permute.xlu1 %v341_v4  ;;  %v21_v7 = vsub.s32 0, %v20_v6  ;;  %v30_v8 = vsub.s32 1, %v20_v6  ;;  %v40_v11 = vsub.s32 2, %v20_v6  ;;  %v50_v13 = vsub.s32 3, %v20_v6  ;;  %s275_s13 = sshll.u32 %s349_s12, 4  ;;  %s276_s13 = int_to_ptr.vmem [resolvable:$true] %s275_s13 }
   0x7   :  { %25 = vperm.xlu0 %308, %v12_v0   ;;  %45 = vperm.xlu1 %310, %v12_v0   ;;  %s316_s14 = scalar_lea.vmem %s276_s13, 128  ;;  %p321_p1 = scmp.lt.s32.totalorder %s276_s13, %s276_s13 }
   0x8   :  { %v22_v14 = vrot.slane %v13_v9, %v21_v7  ;;  %v31_v15 = vrot.slane %v13_v9, %v30_v8  ;;  %v41_v16 = vrot.slane %v13_v9, %v40_v11  ;;  %v51_v17 = vrot.slane %v13_v9, %v50_v13  ;;  %p317_p0 = scmp.ne.s32.totalorder %s276_s13, %s316_s14  ;;  %p322_p2 = scmp.lt.s32.totalorder %s316_s14, %s316_s14 }
   0xa   :  { %p323_p3 = por %p322_p2, %p321_p1 }
   0xb   :  { %311 = vset.pattern.permute.xlu0 %v341_v4 }
   0xc   :  { %p324_p4 = pnand %p323_p3, %p317_p0 }
  0x7d   :  { %v17_v10 = vpop.permute.xlu0 %16  ;;  %v36_v12 = vpop.permute.xlu1 %35 }
  0x7e   :  { %v23_v20 = vmul.f32 %v22_v14, %v17_v10  ;;  %v42_v22 = vmul.f32 %v41_v16, %v36_v12 }
  0x82   :  { %v26_v18 = vpop.permute.xlu0 %25  ;;  %v46_v19 = vpop.permute.xlu1 %45 }
  0x83   :  { %v32_v21 = vmul.f32 %v31_v15, %v26_v18  ;;  %v52_v24 = vmul.f32 %v51_v17, %v46_v19 }
  0x85   :  { %v33_v23 = vadd.f32 %v32_v21, %v23_v20 }
  0x87   :  { %v43_v25 = vadd.f32 %v42_v22, %v33_v23 }
  0x89   :  { %v371_v26 = vadd.f32 %v52_v24, %v43_v25 }
  0x8b   :  { %v57_v27 = vand.u32 2139095040, %v371_v26  ;;  %v54_v28 = vand.u32 2147483647, %v371_v26  ;;  %vm56_vm7 = vcmp.lt.s32.totalorder %v371_v26, 0  ;;  %vm146_vm15 = vweird.f32 %v371_v26 }
  0x8d   :  { %v58_v29 = vshrl.u32 %v57_v27, 23  ;;  %v61_v31 = vand.u32 8388607, %v54_v28  ;;  %vm55_vm8 = vcmp.le.f32.partialorder %v54_v28, 0.7853982 }
  0x8f   :  { %v283_v30 = vadd.s32 4294967169, %v58_v29  ;;  %v62_v34 = vor.u32 8388608, %v61_v31 }
  0x91   :  { %v64_v32 = vadd.s32 1, %v283_v30  ;;  %v102_v42 = vshll.u32 %v62_v34, 8 }
  0x93   :  { %vm65_vm0 = vcmp.gt.s32.totalorder %v64_v32, 0 }
  0x94   :  { %v66_v33 = vsel %vm65_vm0, %v64_v32, 0  ;;  %vm265_vm0 = vcmask 261120  }
  0x95   :  { %v68_v35 = vand.u32 31, %v66_v33  ;;  %v67_v36 = vshrl.u32 %v66_v33, 5 }
  0x97   :  { %v69_v37 = vsub.s32 32, %v68_v35  ;;  %v80_v39 = vshll.u32 %v342_v38, %v68_v35  ;;  %v83_v41 = vshll.u32 %v343_v40, %v68_v35  ;;  %v71_v47 = vshll.u32 %v345_v46, %v68_v35 }
  0x98   :  { %v74_v50 = vshll.u32 %v346_v48, %v68_v35  ;;  %v77_v53 = vshll.u32 %v347_v51, %v68_v35  ;;  %vm89_vm1 = vcmp.lt.s32.totalorder %v67_v36, 4  ;;  %vm86_vm2 = vcmp.lt.s32.totalorder %v67_v36, 1 }
  0x99   :  { %v81_v43 = vshrl.u32 %v343_v40, %v69_v37  ;;  %v84_v45 = vshrl.u32 %v344_v44, %v69_v37  ;;  %v72_v49 = vshrl.u32 %v346_v48, %v69_v37  ;;  %v75_v52 = vshrl.u32 %v347_v51, %v69_v37 }
  0x9a   :  { %v78_v54 = vshrl.u32 %v342_v38, %v69_v37  ;;  %v70_v58 = vshrl.u32 %v345_v46, %v69_v37  ;;  %vm87_vm3 = vcmp.lt.s32.totalorder %v67_v36, 2  ;;  %vm88_vm4 = vcmp.lt.s32.totalorder %v67_v36, 3 }
  0x9b   :  { %v82_v55 = vor.u32 %v81_v43, %v80_v39  ;;  %v85_v56 = vor.u32 %v84_v45, %v83_v41  ;;  %v73_v57 = vor.u32 %v72_v49, %v71_v47  ;;  %v76_v59 = vor.u32 %v75_v52, %v74_v50 }
  0x9c   :  { %v79_v60 = vor.u32 %v78_v54, %v77_v53 }
  0x9d   :  { %v95_v61 = vsel %vm89_vm1, %v82_v55, 920167782  ;;  %v99_v62 = vsel %vm89_vm1, %v85_v56, 1326507024  ;;  %v94_v0 = vsel %vm86_vm2, %v73_v57, %v76_v59  ;;  %v90_v3 = vsel %vm86_vm2, %v70_v58, %v73_v57 }
  0x9e   :  { %v91_v63 = vsel %vm89_vm1, %v79_v60, 2102212464  ;;  %v96_v1 = vsel %vm88_vm4, %v79_v60, %v95_v61  ;;  %v98_v2 = vsel %vm86_vm2, %v76_v59, %v79_v60  ;;  %v100_v6 = vsel %vm88_vm4, %v82_v55, %v99_v62 }
  0x9f   :  { %v92_v4 = vsel %vm88_vm4, %v76_v59, %v91_v63  ;;  %v97_v5 = vsel %vm87_vm3, %v94_v0, %v96_v1  ;;  %v101_v7 = vsel %vm87_vm3, %v98_v2, %v100_v6  ;;  %vm267_vm1 = vcmask 523264  }
  0xa0   :  { %v377_v8 = vmul.u32.u64.low %v102_v42, %v97_v5  ;;  %v378_v9 = vmul.u32.u64.high %v102_v42, %v97_v5, %v377_v8  ;;  %v380_v10 = vmul.u32.u64.low %v102_v42, %v101_v7  ;;  %v381_v11 = vmul.u32.u64.high %v102_v42, %v101_v7, %v380_v10 }
  0xa1   :  { %v93_v12 = vsel %vm87_vm3, %v90_v3, %v92_v4 }
  0xa2   :  { %v112_v13 = vadd.s32 1, %v378_v9  ;;  %v109_v14 = vmul.u32 %v102_v42, %v93_v12  ;;  %vm111_vm5 = vc.u32 %v381_v11, %v377_v8  ;;  %v110_v27 = vadd.s32 %v377_v8, %v381_v11 }
  0xa4   :  { %v113_v15 = vsel %vm111_vm5, %v112_v13, %v378_v9 }
  0xa5   :  { %v114_v16 = vadd.s32 %v113_v15, %v109_v14 }
  0xa7   :  { %v115_v17 = vadd.s32 536870912, %v114_v16 }
  0xa9   :  { %v116_v18 = vshrl.u32 %v115_v17, 30 }
  0xab   :  { %v117_v19 = vshll.u32 %v116_v18, 30  ;;  %v140_v41 = vsub.s32 4, %v116_v18 }
  0xad   :  { %v118_v20 = vsub.s32 %v114_v16, %v117_v19  ;;  %v141_v44 = vsel %vm56_vm7, %v140_v41, %v116_v18 }
  0xae   :  { %v143_v45 = vsel %vm55_vm8, 0, %v141_v44 }
  0xaf   :  { %v120_v21 = vsub.s32 0, %v118_v20  ;;  %v250_v46 = vadd.s32 3, %v143_v45  ;;  %v147_v47 = vand.u32 3, %v143_v45 }
  0xb1   :  { %v284_v22 = vmin.u32 %v120_v21, %v118_v20  ;;  %v251_v48 = vand.u32 3, %v250_v46  ;;  %vm152_vm9 = vcmp.eq.s32.totalorder %v147_v47, 2  ;;  %vm149_vm11 = vcmp.eq.s32.totalorder %v147_v47, 0 }
  0xb2   :  { %vm148_vm13 = vcmp.lt.s32.totalorder %v147_v47, 2 }
  0xb3   :  { %v122_v23 = vclz %v284_v22  ;;  %vm256_vm10 = vcmp.eq.s32.totalorder %v251_v48, 2  ;;  %vm253_vm12 = vcmp.eq.s32.totalorder %v251_v48, 0  ;;  %vm252_vm14 = vcmp.lt.s32.totalorder %v251_v48, 2 }
  0xb5   :  { %v285_v24 = vadd.s32 4294967294, %v122_v23 }
  0xb7   :  { %vm286_vm6 = vcmp.lt.s32.totalorder %v285_v24, 0 }
  0xb8   :  { %v125_v25 = vsel %vm286_vm6, 0, %v285_v24 }
  0xb9   :  { %v126_v29 = vsub.s32 32, %v125_v25  ;;  %v130_v30 = vsub.s32 4294967266, %v125_v25  ;;  %v127_v31 = vshll.u32 %v118_v20, %v125_v25 }
  0xbb   :  { %v128_v32 = vshrl.u32 %v110_v27, %v126_v29  ;;  %v131_v33 = vadd.s32 127, %v130_v30 }
  0xbd   :  { %v129_v34 = vor.u32 %v128_v32, %v127_v31  ;;  %v132_v35 = vshll.u32 %v131_v33, 23 }
  0xbf   :  { %v133_v36 = vor.u32 4788187, %v132_v35  ;;  %v136_v38 = vcvt.s32.f32 %v129_v34 }
  0xc1   :  { %v134_v37 = vand.u32 2147483647, %v133_v36 }
  0xc3   :  { %v137_v39 = vmul.f32 %v136_v38, %v134_v37 }
  0xc5   :  { %v138_v40 = vxor.u32 2147483648, %v137_v39 }
  0xc7   :  { %v139_v42 = vsel %vm56_vm7, %v138_v40, %v137_v39 }
  0xc8   :  { %v142_v43 = vsel %vm55_vm8, %v371_v26, %v139_v42 }
  0xc9   :  { %312 = vcosq.f32 %v142_v43 }
  0xca   :  { %314 = vsinq.f32 %v142_v43 }
  0xd6   :  { %v313_v49 = vpop.eup %312 }
  0xd7   :  { %v315_v50 = vpop.eup %314  ;;  %v153_v51 = vxor.u32 2147483648, %v313_v49 }
  0xd8   :  { %v150_v52 = vxor.u32 2147483648, %v315_v50 }
  0xd9   :  { %v258_v53 = vsel %vm256_vm10, %v153_v51, %v315_v50  ;;  %v154_v28 = vsel %vm152_vm9, %v153_v51, %v315_v50 }
  0xda   :  { %v255_v54 = vsel %vm253_vm12, %v313_v49, %v150_v52  ;;  %v151_v55 = vsel %vm149_vm11, %v313_v49, %v150_v52 }
  0xdb   :  { %v259_v56 = vsel %vm252_vm14, %v255_v54, %v258_v53  ;;  %v155_v57 = vsel %vm148_vm13, %v151_v55, %v154_v28 }
  0xdc   :  { %v260_v58 = vsel %vm146_vm15, nan, %v259_v56  ;;  %v156_v59 = vsel %vm146_vm15, nan, %v155_v57 }
  0xdd   :  { %262 = vrot.lane.b32.xlu1 %v260_v58, %s348_s1 }
 0x14f   :  { %v263_v60 = vpop.permute.xlu1 %262 }
 0x150   :  { %v266_v61 = vsel %vm265_vm0, %v156_v59, %v263_v60 }
 0x151   :  { %268 = vst.msk [vmem:[#allocation2] sm:$0xff] %vm267_vm1, %v266_v61 }
 0x152   :  { %327 = shalt.err (!%p324_p4)
}
 0x153   :  { %278 = dma.vmem_to_hbm [thread:$0]  %s276_s13, 128, %s397_s2, [#allocation3]  }
 0x154   :  { %336 = dma.done.wait [#allocation3], 128  }
 0x155   :  { %337 = vsyncadd [#allocation3], 4294967168 }
 0x156   :  { %282 = vsyncpa [#allocation3], 1 }

</bundles_post_ra>
